<compile_context>
chip_gen: v7x
topology: tpu7x:2x2x1
jax: 0.10.0
libtpu: 0.0.40
codegen_flags: <defaults>
</compile_context>

<pallas_src>
import jax
import jax.numpy as jnp
from jax.experimental import pallas as pl
from jax.experimental.pallas import tpu as pltpu

# ---- static model configuration (small synthetic shapes) --------------------
N, CIN, H, W = 2, 4, 16, 16     # batch, in-channels, spatial
C1 = 8                          # stem conv out channels
C2 = 16                         # hooked 1x1 conv ("mixed_6a.branch1[0]") out channels
NUM_CLASSES = 10
KH = KW = 3
PAD = 1

K = KH * KW * CIN               # 36   im2col contraction size
KFULL = K + 1                   # 37   +1 ones row (bias fold)
HW = H * W                      # 256  spatial positions (lane axis)
NHW = N * HW                    # 512  batch folded into lanes (collapsed path)
LANE = 128                      # lane-dense padding for the logits output


# =============================================================================
# Kernels
# =============================================================================

def _head(selt, wh_ref, bh_ref):
    """ReLU -> GAP -> tiny linear head, kept off the MXU (VPU + sublane reduce)."""
    pooled = jnp.mean(jnp.maximum(selt, 0.0), axis=1, keepdims=True)   # (C2, 1)
    return jnp.sum(pooled * wh_ref[...], axis=0, keepdims=True) + bh_ref[...]  # (1, LANE)


def _kernel_collapsed(patches_ref, w1t_ref, w2t_ref, wh_ref, bh_ref,
                      logits_ref, sel_ref):
    """Single grid step; batch folded into the 512-wide lane axis (v5e/v6e)."""
    # patches_ref: (KFULL, N*HW) bf16, last row = ones (bias fold)
    # w1t_ref:     (C1+1, KFULL) bf16, bias row folded; extra row emits const 1
    # w2t_ref:     (C2, C1+1)    bf16, bias column folded
    h1t = jnp.maximum(
        jnp.dot(w1t_ref[...], patches_ref[...],
                preferred_element_type=jnp.float32), 0.0)               # (C1+1, N*HW)
    selt = jnp.dot(w2t_ref[...], h1t.astype(jnp.bfloat16),
                   preferred_element_type=jnp.float32)                  # (C2, N*HW)

    rows = []
    for n in range(N):                                # static, N=2
        seg = selt[:, n * HW:(n + 1) * HW]            # lane-aligned (256-wide) slice
        sel_ref[n, :, :] = seg                        # unmasked full-vreg stores
        rows.append(_head(seg, wh_ref, bh_ref))       # (1, LANE)
    logits_ref[...] = jnp.concatenate(rows, axis=0)   # (N, LANE), lane-dense


def _kernel_batched(patches_ref, w1t_ref, w2t_ref, wh_ref, bh_ref,
                    logits_ref, sel_ref):
    """One batch element per grid step; grid=(N,) 'parallel' for v7x's 2 TCs."""
    h1t = jnp.maximum(
        jnp.dot(w1t_ref[...], patches_ref[...],
                preferred_element_type=jnp.float32), 0.0)               # (C1+1, HW)
    selt = jnp.dot(w2t_ref[...], h1t.astype(jnp.bfloat16),
                   preferred_element_type=jnp.float32)                  # (C2, HW)
    sel_ref[...] = selt
    logits_ref[...] = _head(selt, wh_ref, bh_ref)                       # (1, LANE)


# =============================================================================
# Wrapper-side data prep (fused XLA gathers / folds; tiny at these sizes)
# =============================================================================

def _pad_input(x_nchw):
    return jnp.pad(x_nchw.astype(jnp.float32),
                   ((0, 0), (0, 0), (PAD, PAD), (PAD, PAD)))


def _im2col_collapsed(x_nchw):
    """(N,CIN,H,W) -> (KFULL, N*HW) bf16; rows = (kh*KW+kw)*CIN + c, cols = (n,h,w)."""
    xp = _pad_input(x_nchw)
    taps = jnp.stack([xp[:, :, kh:kh + H, kw:kw + W]
                      for kh in range(KH) for kw in range(KW)], axis=0)  # (9,N,CIN,H,W)
    pt = jnp.transpose(taps, (0, 2, 1, 3, 4)).reshape(K, NHW)            # (36, 512)
    ones = jnp.ones((1, NHW), jnp.float32)
    return jnp.concatenate([pt, ones], axis=0).astype(jnp.bfloat16)      # (37, 512)


def _im2col_batched(x_nchw):
    """(N,CIN,H,W) -> (N, KFULL, HW) bf16; same row ordering, per-batch blocks."""
    xp = _pad_input(x_nchw)
    taps = [xp[:, :, kh:kh + H, kw:kw + W]
            for kh in range(KH) for kw in range(KW)]                     # 9 x (N,CIN,H,W)
    pt = jnp.concatenate(taps, axis=1).reshape(N, K, HW)                 # (N, 36, 256)
    ones = jnp.ones((N, 1, HW), jnp.float32)
    return jnp.concatenate([pt, ones], axis=1).astype(jnp.bfloat16)      # (N, 37, 256)


def _prep_weights(params):
    """Fold biases into transposed matmul weights (bf16) and pad the head to 128 lanes."""
    w1_flat = params["w1"].reshape(K, C1)                                # (36, C1)
    w1_aug = jnp.concatenate([w1_flat, params["b1"]], axis=0)            # (37, C1)
    ones_out = jnp.zeros((KFULL, 1), jnp.float32).at[K, 0].set(1.0)      # const-1 output col
    w1_aug = jnp.concatenate([w1_aug, ones_out], axis=1)                 # (37, C1+1)
    w1t = jnp.transpose(w1_aug).astype(jnp.bfloat16)                     # (C1+1, 37)

    w2_aug = jnp.concatenate([params["w2"], params["b2"]], axis=0)       # (C1+1, C2)
    w2t = jnp.transpose(w2_aug).astype(jnp.bfloat16)                     # (C2, C1+1)

    wh_pad = jnp.zeros((C2, LANE), jnp.float32).at[:, :NUM_CLASSES].set(params["wh"])
    bh_pad = jnp.zeros((1, LANE), jnp.float32).at[:, :NUM_CLASSES].set(params["bh"])
    return w1t, w2t, wh_pad, bh_pad


def _has_two_tensorcores():
    """True on v7x-class chips (2 TCs/chip); v5e/v6e are single-TC."""
    try:
        kind = jax.devices()[0].device_kind.lower()
    except Exception:
        return False
    return ("v7" in kind) or ("7x" in kind)


# =============================================================================
# pallas_call wrappers
# =============================================================================

def _forward_collapsed(x_nchw, w1t, w2t, wh_pad, bh_pad):
    patches = _im2col_collapsed(x_nchw)                                  # (37, 512) bf16
    in_specs = [
        pl.BlockSpec((KFULL, NHW), lambda i: (0, 0)),                    # im2col patches
        pl.BlockSpec((C1 + 1, KFULL), lambda i: (0, 0)),                 # w1^T (+bias)
        pl.BlockSpec((C2, C1 + 1), lambda i: (0, 0)),                    # w2^T (+bias)
        pl.BlockSpec((C2, LANE), lambda i: (0, 0)),                      # head weight (padded)
        pl.BlockSpec((1, LANE), lambda i: (0, 0)),                       # head bias (padded)
    ]
    out_specs = [
        pl.BlockSpec((N, LANE), lambda i: (0, 0)),                       # lane-dense logits
        pl.BlockSpec((N, C2, HW), lambda i: (0, 0, 0)),                  # selected_out
    ]
    out_shape = [
        jax.ShapeDtypeStruct((N, LANE), jnp.float32),
        jax.ShapeDtypeStruct((N, C2, HW), jnp.float32),
    ]
    return pl.pallas_call(
        _kernel_collapsed,
        grid=(1,),
        in_specs=in_specs,
        out_specs=out_specs,
        out_shape=out_shape,
        compiler_params=pltpu.CompilerParams(dimension_semantics=("arbitrary",)),
    )(patches, w1t, w2t, wh_pad, bh_pad)


def _forward_batch_parallel(x_nchw, w1t, w2t, wh_pad, bh_pad):
    patches = _im2col_batched(x_nchw)                                    # (N, 37, 256) bf16
    in_specs = [
        pl.BlockSpec((None, KFULL, HW), lambda n: (n, 0, 0)),            # per-batch patches
        pl.BlockSpec((C1 + 1, KFULL), lambda n: (0, 0)),                 # w1^T (+bias)
        pl.BlockSpec((C2, C1 + 1), lambda n: (0, 0)),                    # w2^T (+bias)
        pl.BlockSpec((C2, LANE), lambda n: (0, 0)),                      # head weight (padded)
        pl.BlockSpec((1, LANE), lambda n: (0, 0)),                       # head bias (padded)
    ]
    out_specs = [
        pl.BlockSpec((None, 1, LANE), lambda n: (n, 0, 0)),              # lane-dense logits
        pl.BlockSpec((None, C2, HW), lambda n: (n, 0, 0)),               # selected_out
    ]
    out_shape = [
        jax.ShapeDtypeStruct((N, 1, LANE), jnp.float32),
        jax.ShapeDtypeStruct((N, C2, HW), jnp.float32),
    ]
    return pl.pallas_call(
        _kernel_batched,
        grid=(N,),
        in_specs=in_specs,
        out_specs=out_specs,
        out_shape=out_shape,
        compiler_params=pltpu.CompilerParams(
            # batch elements are independent -> shard across v7x's 2 TensorCores
            dimension_semantics=("parallel",)),
    )(patches, w1t, w2t, wh_pad, bh_pad)


def gradcam_forward(x_nchw, params):
    """x_nchw: (N, CIN, H, W) float32 (PyTorch NCHW). Returns (logits, selected_out).

    logits:       (N, NUM_CLASSES)
    selected_out: (N, C2, H, W)   (NCHW, matching the PyTorch hook output)
    """
    w1t, w2t, wh_pad, bh_pad = _prep_weights(params)
    if _has_two_tensorcores():
        logits_pad, sel_t = _forward_batch_parallel(x_nchw, w1t, w2t, wh_pad, bh_pad)
    else:
        logits_pad, sel_t = _forward_collapsed(x_nchw, w1t, w2t, wh_pad, bh_pad)
    logits = logits_pad.reshape(N, LANE)[:, :NUM_CLASSES]
    sel_nchw = sel_t.reshape(N, C2, H, W)       # pure reshape: already NCHW-ordered
    return logits, sel_nchw


# =============================================================================
# Pure-JAX reference & params
# =============================================================================

def reference_forward(x_nchw, params):
    x = jnp.transpose(x_nchw, (0, 2, 3, 1)).astype(jnp.float32)
    h1 = jax.lax.conv_general_dilated(
        x, params["w1"], window_strides=(1, 1), padding="SAME",
        dimension_numbers=("NHWC", "HWIO", "NHWC")) + params["b1"].reshape(1, 1, 1, C1)
    h1 = jnp.maximum(h1, 0.0)
    sel = jnp.einsum("nhwc,cd->nhwd", h1, params["w2"]) + params["b2"].reshape(1, 1, 1, C2)
    h2 = jnp.maximum(sel, 0.0)
    pooled = jnp.mean(h2, axis=(1, 2))
    logits = pooled @ params["wh"] + params["bh"].reshape(1, NUM_CLASSES)
    return logits, jnp.transpose(sel, (0, 3, 1, 2))


def init_params():
    key = jax.random.PRNGKey(0)
    k1, k2, k3, k4, k5, k6 = jax.random.split(key, 6)
    return {
        "w1": 0.1 * jax.random.normal(k1, (KH, KW, CIN, C1), jnp.float32),
        "b1": 0.1 * jax.random.normal(k2, (1, C1), jnp.float32),
        "w2": 0.1 * jax.random.normal(k3, (C1, C2), jnp.float32),
        "b2": 0.1 * jax.random.normal(k4, (1, C2), jnp.float32),
        "wh": 0.1 * jax.random.normal(k5, (C2, NUM_CLASSES), jnp.float32),
        "bh": 0.1 * jax.random.normal(k6, (1, NUM_CLASSES), jnp.float32),
    }


if __name__ == "__main__":
    params = init_params()
    x = jax.random.normal(jax.random.PRNGKey(0), (N, CIN, H, W), jnp.float32)

    logits, selected_out = gradcam_forward(x, params)
    jax.block_until_ready((logits, selected_out))

    ref_logits, ref_sel = reference_forward(x, params)
    assert logits.shape == (N, NUM_CLASSES)
    assert selected_out.shape == (N, C2, H, W)
    # bf16 MXU operands -> relaxed tolerance vs the f32 reference.
    assert jnp.allclose(logits, ref_logits, atol=2e-2, rtol=2e-2)
    assert jnp.allclose(selected_out, ref_sel, atol=2e-2, rtol=2e-2)

    # TODO(synk): gradient hooks (activations_hook / get_act_grads) are a
    # backward-pass feature and are not reproduced here (forward only).
    print("KERNEL_OK")
</pallas_src>

<mosaic_0001>
module attributes {stable_mosaic.version = 11 : i64} {
  func.func @_kernel_collapsed(%arg0: i32, %arg1: memref<37x512xbf16, #tpu.memory_space<vmem>>, %arg2: memref<9x37xbf16, #tpu.memory_space<vmem>>, %arg3: memref<16x9xbf16, #tpu.memory_space<vmem>>, %arg4: memref<16x128xf32, #tpu.memory_space<vmem>>, %arg5: memref<1x128xf32, #tpu.memory_space<vmem>>, %arg6: memref<2x128xf32, #tpu.memory_space<vmem>>, %arg7: memref<2x16x256xf32, #tpu.memory_space<vmem>>) attributes {dimension_semantics = [#tpu.dimension_semantics<arbitrary>], iteration_bounds = array<i64: 1>, scalar_prefetch = 0 : i64, scratch_operands = 0 : i64, tpu.core_type = #tpu.core_type<tc>, window_params = [{pipeline_mode = #tpu.pipeline_mode<synchronous>, transform_indices = @transform_0, window_bounds = array<i64: 37, 512>}, {pipeline_mode = #tpu.pipeline_mode<synchronous>, transform_indices = @transform_1, window_bounds = array<i64: 9, 37>}, {pipeline_mode = #tpu.pipeline_mode<synchronous>, transform_indices = @transform_2, window_bounds = array<i64: 16, 9>}, {pipeline_mode = #tpu.pipeline_mode<synchronous>, transform_indices = @transform_3, window_bounds = array<i64: 16, 128>}, {pipeline_mode = #tpu.pipeline_mode<synchronous>, transform_indices = @transform_4, window_bounds = array<i64: 1, 128>}, {pipeline_mode = #tpu.pipeline_mode<synchronous>, transform_indices = @transform_5, window_bounds = array<i64: 2, 128>}, {pipeline_mode = #tpu.pipeline_mode<synchronous>, transform_indices = @transform_6, window_bounds = array<i64: 2, 16, 256>}]} {
    %c0 = arith.constant 0 : index
    %c0_0 = arith.constant 0 : index
    %0 = vector.load %arg2[%c0, %c0_0] : memref<9x37xbf16, #tpu.memory_space<vmem>>, vector<9x37xbf16>
    %c0_1 = arith.constant 0 : index
    %c0_2 = arith.constant 0 : index
    %1 = vector.load %arg1[%c0_1, %c0_2] : memref<37x512xbf16, #tpu.memory_space<vmem>>, vector<37x512xbf16>
    %cst = arith.constant dense<0.000000e+00> : vector<9x512xf32>
    %2 = tpu.matmul %0, %1, %cst {dimension_numbers = #tpu.dot_dimension_numbers<[1], [0], [0], [1], [0, 0, 1, 1], [], []>} : vector<9x37xbf16>, vector<37x512xbf16>, vector<9x512xf32> -> vector<9x512xf32>
    %cst_3 = arith.constant 0.000000e+00 : f32
    %3 = vector.broadcast %cst_3 : f32 to vector<9x512xf32>
    %4 = arith.maximumf %2, %3 : vector<9x512xf32>
    %c0_4 = arith.constant 0 : index
    %c0_5 = arith.constant 0 : index
    %5 = vector.load %arg3[%c0_4, %c0_5] : memref<16x9xbf16, #tpu.memory_space<vmem>>, vector<16x9xbf16>
    %6 = arith.truncf %4 : vector<9x512xf32> to vector<9x512xbf16>
    %cst_6 = arith.constant dense<0.000000e+00> : vector<16x512xf32>
    %7 = tpu.matmul %5, %6, %cst_6 {dimension_numbers = #tpu.dot_dimension_numbers<[1], [0], [0], [1], [0, 0, 1, 1], [], []>} : vector<16x9xbf16>, vector<9x512xbf16>, vector<16x512xf32> -> vector<16x512xf32>
    %8 = vector.extract_strided_slice %7 {offsets = [0, 0], sizes = [16, 256], strides = [1, 1]} : vector<16x512xf32> to vector<16x256xf32>
    %c0_7 = arith.constant 0 : index
    %c0_8 = arith.constant 0 : index
    %c0_9 = arith.constant 0 : index
    %9 = vector.load %arg7[%c0_7, %c0_8, %c0_9] : memref<2x16x256xf32, #tpu.memory_space<vmem>>, vector<1x16x256xf32>
    %10 = vector.shape_cast %9 : vector<1x16x256xf32> to vector<16x256xf32>
    %11 = vector.shape_cast %8 : vector<16x256xf32> to vector<1x16x256xf32>
    tpu.vector_store %arg7[%c0_7, %c0_8, %c0_9], %11 {strides = array<i32>} : memref<2x16x256xf32, #tpu.memory_space<vmem>>, vector<1x16x256xf32>,
    %cst_10 = arith.constant 0.000000e+00 : f32
    %12 = vector.broadcast %cst_10 : f32 to vector<16x256xf32>
    %13 = arith.maximumf %8, %12 : vector<16x256xf32>
    %cst_11 = arith.constant dense<0.000000e+00> : vector<16xf32>
    %14 = vector.multi_reduction <add>, %13, %cst_11 [1] : vector<16x256xf32> to vector<16xf32>
    %15 = vector.shape_cast %14 : vector<16xf32> to vector<16x1xf32>
    %cst_12 = arith.constant 2.560000e+02 : f32
    %16 = vector.broadcast %cst_12 : f32 to vector<16x1xf32>
    %17 = arith.divf %15, %16 : vector<16x1xf32>
    %c0_13 = arith.constant 0 : index
    %c0_14 = arith.constant 0 : index
    %18 = vector.load %arg4[%c0_13, %c0_14] : memref<16x128xf32, #tpu.memory_space<vmem>>, vector<16x128xf32>
    %19 = vector.broadcast %17 : vector<16x1xf32> to vector<16x128xf32>
    %20 = arith.mulf %19, %18 : vector<16x128xf32>
    %cst_15 = arith.constant dense<0.000000e+00> : vector<128xf32>
    %21 = vector.multi_reduction <add>, %20, %cst_15 [0] : vector<16x128xf32> to vector<128xf32>
    %22 = vector.shape_cast %21 : vector<128xf32> to vector<1x128xf32>
    %c0_16 = arith.constant 0 : index
    %c0_17 = arith.constant 0 : index
    %23 = vector.load %arg5[%c0_16, %c0_17] : memref<1x128xf32, #tpu.memory_space<vmem>>, vector<1x128xf32>
    %24 = arith.addf %22, %23 : vector<1x128xf32>
    %25 = vector.extract_strided_slice %7 {offsets = [0, 256], sizes = [16, 256], strides = [1, 1]} : vector<16x512xf32> to vector<16x256xf32>
    %c1 = arith.constant 1 : index
    %c0_18 = arith.constant 0 : index
    %c0_19 = arith.constant 0 : index
    %26 = vector.load %arg7[%c1, %c0_18, %c0_19] : memref<2x16x256xf32, #tpu.memory_space<vmem>>, vector<1x16x256xf32>
    %27 = vector.shape_cast %26 : vector<1x16x256xf32> to vector<16x256xf32>
    %28 = vector.shape_cast %25 : vector<16x256xf32> to vector<1x16x256xf32>
    tpu.vector_store %arg7[%c1, %c0_18, %c0_19], %28 {strides = array<i32>} : memref<2x16x256xf32, #tpu.memory_space<vmem>>, vector<1x16x256xf32>,
    %cst_20 = arith.constant 0.000000e+00 : f32
    %29 = vector.broadcast %cst_20 : f32 to vector<16x256xf32>
    %30 = arith.maximumf %25, %29 : vector<16x256xf32>
    %cst_21 = arith.constant dense<0.000000e+00> : vector<16xf32>
    %31 = vector.multi_reduction <add>, %30, %cst_21 [1] : vector<16x256xf32> to vector<16xf32>
    %32 = vector.shape_cast %31 : vector<16xf32> to vector<16x1xf32>
    %cst_22 = arith.constant 2.560000e+02 : f32
    %33 = vector.broadcast %cst_22 : f32 to vector<16x1xf32>
    %34 = arith.divf %32, %33 : vector<16x1xf32>
    %c0_23 = arith.constant 0 : index
    %c0_24 = arith.constant 0 : index
    %35 = vector.load %arg4[%c0_23, %c0_24] : memref<16x128xf32, #tpu.memory_space<vmem>>, vector<16x128xf32>
    %36 = vector.broadcast %34 : vector<16x1xf32> to vector<16x128xf32>
    %37 = arith.mulf %36, %35 : vector<16x128xf32>
    %cst_25 = arith.constant dense<0.000000e+00> : vector<128xf32>
    %38 = vector.multi_reduction <add>, %37, %cst_25 [0] : vector<16x128xf32> to vector<128xf32>
    %39 = vector.shape_cast %38 : vector<128xf32> to vector<1x128xf32>
    %c0_26 = arith.constant 0 : index
    %c0_27 = arith.constant 0 : index
    %40 = vector.load %arg5[%c0_26, %c0_27] : memref<1x128xf32, #tpu.memory_space<vmem>>, vector<1x128xf32>
    %41 = arith.addf %39, %40 : vector<1x128xf32>
    %42 = tpu.concatenate %24, %41 in 0 : vector<1x128xf32>, vector<1x128xf32> -> vector<2x128xf32>
    %c0_28 = arith.constant 0 : index
    %c0_29 = arith.constant 0 : index
    %43 = vector.load %arg6[%c0_28, %c0_29] : memref<2x128xf32, #tpu.memory_space<vmem>>, vector<2x128xf32>
    tpu.vector_store %arg6[%c0_28, %c0_29], %42 {strides = array<i32>} : memref<2x128xf32, #tpu.memory_space<vmem>>, vector<2x128xf32>,
    return
  }
  func.func @transform_0(%arg0: i32) -> (i32, i32) {
    %c0_i32 = arith.constant 0 : i32
    %c0_i32_0 = arith.constant 0 : i32
    %c0_i32_1 = arith.constant 0 : i32
    return %c0_i32, %c0_i32_0 : i32, i32
  }
  func.func @transform_1(%arg0: i32) -> (i32, i32) {
    %c0_i32 = arith.constant 0 : i32
    %c0_i32_0 = arith.constant 0 : i32
    %c0_i32_1 = arith.constant 0 : i32
    return %c0_i32, %c0_i32_0 : i32, i32
  }
  func.func @transform_2(%arg0: i32) -> (i32, i32) {
    %c0_i32 = arith.constant 0 : i32
    %c0_i32_0 = arith.constant 0 : i32
    %c0_i32_1 = arith.constant 0 : i32
    return %c0_i32, %c0_i32_0 : i32, i32
  }
  func.func @transform_3(%arg0: i32) -> (i32, i32) {
    %c0_i32 = arith.constant 0 : i32
    %c0_i32_0 = arith.constant 0 : i32
    %c0_i32_1 = arith.constant 0 : i32
    return %c0_i32, %c0_i32_0 : i32, i32
  }
  func.func @transform_4(%arg0: i32) -> (i32, i32) {
    %c0_i32 = arith.constant 0 : i32
    %c0_i32_0 = arith.constant 0 : i32
    %c0_i32_1 = arith.constant 0 : i32
    return %c0_i32, %c0_i32_0 : i32, i32
  }
  func.func @transform_5(%arg0: i32) -> (i32, i32) {
    %c0_i32 = arith.constant 0 : i32
    %c0_i32_0 = arith.constant 0 : i32
    %c0_i32_1 = arith.constant 0 : i32
    return %c0_i32, %c0_i32_0 : i32, i32
  }
  func.func @transform_6(%arg0: i32) -> (i32, i32, i32) {
    %c0_i32 = arith.constant 0 : i32
    %c0_i32_0 = arith.constant 0 : i32
    %c0_i32_1 = arith.constant 0 : i32
    %c0_i32_2 = arith.constant 0 : i32
    return %c0_i32, %c0_i32_0, %c0_i32_1 : i32, i32, i32
  }
}

</mosaic_0001>

<bundles_post_ra>
// kernel: tpu_custom_call.1
= control target key start
LH: loop header
LB: loop body
LE: loop exit
PB: predicated region body
PF: predicated region fallthrough
CT: control target
= control target key end

     0   :  { %12 = vsyncpa [#allocation3], 0  ;;  %s815_s0 = inlined_call_operand.hbm [shape: bf16[37,512], index: 0, kind: input, shape index: {}]   ;;  %s816_s1 = inlined_call_operand.hbm [shape: bf16[9,37], index: 1, kind: input, shape index: {}]   ;;  %s817_s2 = inlined_call_operand.hbm [shape: bf16[16,9], index: 2, kind: input, shape index: {}]   ;;  %s818_s3 = inlined_call_operand.hbm [shape: f32[16,128], index: 3, kind: input, shape index: {}]   ;;  %s819_s4 = inlined_call_operand.vmem [shape: f32[1,128], index: 4, kind: input, shape index: {}]   ;;  %s820_s5 = inlined_call_operand.hbm [shape: f32[2,128], index: 5, kind: output, shape index: {0}]   ;;  %s821_s6 = inlined_call_operand.hbm [shape: f32[2,16,256], index: 6, kind: output, shape index: {1}]  }
   0x1   :  { %13 = vsyncpa [#allocation6], 0 }
   0x2   :  { %14 = vsyncpa [#allocation9], 0 }
   0x3   :  { %15 = vsyncpa [#allocation4], 0 }
   0x4   :  { %16 = vsyncpa [#allocation12], 0  ;;  %s669_s21 = smov [#allocation5]   ;;  %s527_s25 = scalar_lea.hbm %s816_s1, 128 }
   0x5   :  { %s34_s22 = sshll.u32 %s669_s21, 4  ;;  %p528_p0 = scmp.ne.s32.totalorder %s816_s1, %s527_s25  ;;  %s35_s22 = int_to_ptr.vmem [resolvable:$true] %s34_s22 }
   0x6   :  { %p531_p1 = scmp.lt.u32.totalorder %s527_s25, %s816_s1 }
   0x8   :  { %p533_p2 = pnand %p531_p1, %p528_p0 }
   0xa   :  { %536 = shalt.err (!%p533_p2)
}
   0xb   :  { %s537_s30 = scalar_lea.vmem %s35_s22, 128  ;;  %p542_p4 = scmp.lt.s32.totalorder %s35_s22, %s35_s22 }
   0xc   :  { %p538_p3 = scmp.ne.s32.totalorder %s35_s22, %s537_s30  ;;  %p543_p5 = scmp.lt.s32.totalorder %s537_s30, %s537_s30 }
   0xe   :  { %p544_p6 = por %p543_p5, %p542_p4 }
  0x10   :  { %p545_p7 = pnand %p544_p6, %p538_p3 }
  0x12   :  { %548 = shalt.err (!%p545_p7)
}
  0x13   :  { %s670_s7 = smov 64   ;;  %s671_s8 = smov 4  }
  0x14   :  { %40 = dma.hbm_to_vmem [thread:$0]  %s816_s1, 128, %s35_s22, [#allocation6], %s670_s7, %s670_s7, %s671_s8  }
  0x15   :  { %s672_s11 = smov [#allocation2]   ;;  %s549_s15 = scalar_lea.hbm %s815_s0, 1280 }
  0x16   :  { %s22_s12 = sshll.u32 %s672_s11, 4  ;;  %p550_p8 = scmp.ne.s32.totalorder %s815_s0, %s549_s15  ;;  %s23_s12 = int_to_ptr.vmem [resolvable:$true] %s22_s12 }
  0x17   :  { %p553_p9 = scmp.lt.u32.totalorder %s549_s15, %s815_s0 }
  0x19   :  { %p555_p10 = pnand %p553_p9, %p550_p8 }
  0x1b   :  { %558 = shalt.err (!%p555_p10)
}
  0x1c   :  { %s559_s20 = scalar_lea.vmem %s23_s12, 1280  ;;  %p564_p12 = scmp.lt.s32.totalorder %s23_s12, %s23_s12 }
  0x1d   :  { %p560_p11 = scmp.ne.s32.totalorder %s23_s12, %s559_s20  ;;  %p565_p13 = scmp.lt.s32.totalorder %s559_s20, %s559_s20 }
  0x1f   :  { %p566_p0 = por %p565_p13, %p564_p12 }
  0x21   :  { %p567_p1 = pnand %p566_p0, %p560_p11 }
  0x23   :  { %570 = shalt.err (!%p567_p1)
}
  0x24   :  { %s673_s1 = smov 256   ;;  %s674_s21 = smov 16  }
  0x25   :  { %28 = dma.hbm_to_vmem [thread:$0]  %s815_s0, 1280, %s23_s12, [#allocation3], %s673_s1, %s673_s1, %s674_s21  }
  0x26   :  { %s675_s24 = smov [#allocation7]   ;;  %s676_s26 = smov [#allocation8]  }
  0x27   :  { %s46_s25 = sshll.u32 %s675_s24, 4  ;;  %s58_s27 = sshll.u32 %s676_s26, 4  ;;  %s47_s25 = int_to_ptr.vmem [resolvable:$true] %s46_s25  ;;  %s748_s27 = int_to_ptr.vmem [resolvable:$true] %s58_s27 }
  0x28   :  { %s571_s30 = scalar_lea.hbm %s817_s2, 128 }
  0x29   :  { %p572_p2 = scmp.ne.s32.totalorder %s817_s2, %s571_s30  ;;  %p575_p3 = scmp.lt.u32.totalorder %s571_s30, %s817_s2 }
  0x2b   :  { %p577_p4 = pnand %p575_p3, %p572_p2 }
  0x2d   :  { %580 = shalt.err (!%p577_p4)
}
  0x2e   :  { %s581_s0 = scalar_lea.vmem %s47_s25, 128  ;;  %p586_p6 = scmp.lt.s32.totalorder %s47_s25, %s47_s25 }
  0x2f   :  { %p582_p5 = scmp.ne.s32.totalorder %s47_s25, %s581_s0  ;;  %p587_p7 = scmp.lt.s32.totalorder %s581_s0, %s581_s0 }
  0x31   :  { %p588_p8 = por %p587_p7, %p586_p6 }
  0x33   :  { %p589_p9 = pnand %p588_p8, %p582_p5 }
  0x35   :  { %592 = shalt.err (!%p589_p9)
}
  0x36   :  { %52 = dma.hbm_to_vmem [thread:$0]  %s817_s2, 128, %s47_s25, [#allocation6], %s670_s7, %s670_s7, %s671_s8  }
  0x37   :  { %s593_s17 = scalar_lea.hbm %s818_s3, 256 }
  0x38   :  { %p594_p10 = scmp.ne.s32.totalorder %s818_s3, %s593_s17  ;;  %p597_p11 = scmp.lt.u32.totalorder %s593_s17, %s818_s3 }
  0x3a   :  { %p599_p12 = pnand %p597_p11, %p594_p10 }
  0x3c   :  { %602 = shalt.err (!%p599_p12)
}
  0x3d   :  { %s603_s23 = scalar_lea.vmem %s748_s27, 256  ;;  %p608_p0 = scmp.lt.s32.totalorder %s748_s27, %s748_s27 }
  0x3e   :  { %p604_p13 = scmp.ne.s32.totalorder %s748_s27, %s603_s23  ;;  %p609_p1 = scmp.lt.s32.totalorder %s603_s23, %s603_s23 }
  0x40   :  { %p610_p2 = por %p609_p1, %p608_p0 }
  0x42   :  { %p611_p3 = pnand %p610_p2, %p604_p13 }
  0x44   :  { %614 = shalt.err (!%p611_p3)
}
  0x45   :  { %s677_s2 = smov 128   ;;  %s678_s7 = smov 8  }
  0x46   :  { %64 = dma.hbm_to_vmem [thread:$0]  %s818_s3, 256, %s748_s27, [#allocation9], %s677_s2, %s677_s2, %s678_s7  }
  0x47   :  { %659 = dma.done.wait [#allocation3], 1280  }
  0x48   :  { %660 = vsyncadd [#allocation3], 4294966016 }
  0x49   :  { %661 = dma.done.wait [#allocation6], 256  }
  0x4a   :  { %662 = vsyncadd [#allocation6], 4294967040 }
  0x4b   :  { %663 = dma.done.wait [#allocation9], 256  }
  0x4c   :  { %664 = vsyncadd [#allocation9], 4294967040  ;;  %v679_v0 = vmov 0   ;;  %vm151_vm0 = vcmask 1041408   ;;  %v509_v1 = vld [vmem:[#allocation2 + $0x4] ss:$16 sps:$4 sm:$0xff]  }
  0x4d   :  { %199 = vmatprep.mubr.bf16.mxu0 %v679_v0  ;;  %242 = vmatprep.mubr.bf16.mxu1 %v679_v0  ;;  %v511_v2 = vld [vmem:[#allocation2 + $0xc] ss:$16 sps:$4 sm:$0xff]   ;;  %vm152_vm1 = vcmask 1042432   ;;  %v680_v3 = vmov 65535   ;;  %v513_v5 = vld [vmem:[#allocation2] ss:$16 sps:$4 sm:$0xff]  }
  0x4e   :  { %v153_v4 = vsel %vm151_vm0, 4294967295, %v680_v3  ;;  %167 = vmatprep.subr.bf16.mxu0 %v509_v1  ;;  %v514_v6 = vld [vmem:[#allocation2 + $0x8] ss:$16 sps:$4 sm:$0xff]   ;;  %210 = vmatprep.subr.bf16.mxu1 %v511_v2  ;;  %v515_v7 = vld [vmem:[#allocation2 + $0x24] ss:$16 sps:$4 sm:$0xff]   ;;  %vm147_vm2 = vcmask 302080  }
  0x4f   :  { %168 = vmatpush1.bf16.msra.mxu0 %v513_v5  ;;  %211 = vmatpush1.bf16.msra.mxu1 %v514_v6  ;;  %v517_v8 = vld [vmem:[#allocation2 + $0x2c] ss:$16 sps:$4 sm:$0xff]   ;;  %v519_v9 = vld [vmem:[#allocation2 + $0x20] ss:$16 sps:$4 sm:$0xff]   ;;  %v154_v10 = vsel %vm152_vm1, %v153_v4, 0  ;;  %vm276_vm3 = vcmask 1043456  }
  0x50   :  { %169 = vmatprep.subr.bf16.mxu0 %v515_v7  ;;  %v520_v11 = vld [vmem:[#allocation2 + $0x28] ss:$16 sps:$4 sm:$0xff]   ;;  %v90_v12 = vld [vmem:[#allocation2 + $0x40] sm:$0x77]  ;;  %212 = vmatprep.subr.bf16.mxu1 %v517_v8  ;;  %v525_v22 = vld [vmem:[#allocation5] sm:$0x1f]  }
  0x51   :  { %v91_v13 = vld [vmem:[#allocation2 + $0x48] sm:$0x77]  ;;  %v487_v14 = vcombine.high %v90_v12, %v90_v12  ;;  %v486_v16 = vcombine.low %v90_v12, %v90_v12  ;;  %vm277_vm4 = vcmask 1044480   ;;  %v278_v30 = vsel %vm276_vm3, 4294967295, %v680_v3  ;;  %v526_v49 = vld [vmem:[#allocation7] sm:$0xff]   ;;  %s681_s3 = smov [#allocation11]  }
  0x52   :  { %v489_v15 = vcombine.high %v91_v13, %v91_v13  ;;  %v488_v17 = vcombine.low %v91_v13, %v91_v13  ;;  %v279_v41 = vsel %vm277_vm4, %v278_v30, 0  ;;  %vm272_vm5 = vcmask 72704   ;;  %s459_s25 = sshll.u32 %s681_s3, 4  ;;  %s460_s25 = int_to_ptr.vmem [resolvable:$true] %s459_s25 }
  0x53   :  { %170 = vmatpush1.bf16.msra.mxu0 %v519_v9  ;;  %213 = vmatpush1.bf16.msra.mxu1 %v520_v11  ;;  %v159_v18 = vand.u32 %v487_v14, %v154_v10  ;;  %v156_v20 = vand.u32 %v486_v16, %v154_v10  ;;  %s615_s26 = scalar_lea.vmem %s460_s25, 1024  ;;  %p620_p5 = scmp.lt.s32.totalorder %s460_s25, %s460_s25 }
  0x54   :  { %v165_v19 = vand.u32 %v489_v15, %v154_v10  ;;  %v162_v21 = vand.u32 %v488_v17, %v154_v10  ;;  %p616_p4 = scmp.ne.s32.totalorder %s460_s25, %s615_s26  ;;  %p621_p6 = scmp.lt.s32.totalorder %s615_s26, %s615_s26 }
  0x55   :  { %171 = vmatprep.subr.bf16.mxu0 %v159_v18 }
  0x56   :  { %214 = vmatprep.subr.bf16.mxu1 %v165_v19  ;;  %p622_p7 = por %p621_p6, %p620_p5 }
  0x57   :  { %172 = vmatpush1.bf16.msra.mxu0 %v156_v20  ;;  %215 = vmatpush1.bf16.msra.mxu1 %v162_v21 }
  0x58   :  { %p623_p8 = pnand %p622_p7, %p616_p4 }
  0x5a   :  { %490 = vmatmul.mubr.msk.bf16.vlgmr.msra.gmra.mrb[0].mxu0 %vm147_vm2, %v525_v22  ;;  %491 = vmatmul.mubr.msk.bf16.vlgmr.msra.gmra.mrb[0].mxu1 %vm147_vm2, %v525_v22 }
  0x5b   :  { %324 = vmatprep.mubr.bf16.mxu0 %v679_v0  ;;  %367 = vmatprep.mubr.bf16.mxu1 %v679_v0 }
 0x12d   :  { %v201_v23 = vpop.f32.mrb[0].mxu0  ;;  %v244_v24 = vpop.f32.mrb[0].mxu1 }
 0x12e   :  { %v253_v25 = vmax.f32 %v201_v23, 0.0  ;;  %v203_v26 = vpop.f32.mrb[1].mxu0  ;;  %v246_v27 = vpop.f32.mrb[1].mxu1  ;;  %v255_v32 = vmax.f32 %v244_v24, 0.0 }
 0x12f   :  { %v254_v28 = vmax.f32 %v203_v26, 0.0  ;;  %v205_v29 = vpop.f32.mrb[2].mxu0  ;;  %v248_v31 = vpop.f32.mrb[2].mxu1  ;;  %v256_v37 = vmax.f32 %v246_v27, 0.0 }
 0x130   :  { %v257_v33 = vmax.f32 %v205_v29, 0.0  ;;  %v259_v34 = vmax.f32 %v248_v31, 0.0  ;;  %v207_v35 = vpop.f32.mrb[3].mxu0  ;;  %v250_v36 = vpop.f32.mrb[3].mxu1 }
 0x131   :  { %v258_v38 = vmax.f32 %v207_v35, 0.0  ;;  %v260_v39 = vmax.f32 %v250_v36, 0.0 }
 0x132   :  { %v263_v40 = vpack.c.bf16 %v257_v33, %v253_v25  ;;  %v265_v42 = vpack.c.bf16 %v259_v34, %v255_v32 }
 0x133   :  { %v264_v43 = vpack.c.bf16 %v258_v38, %v254_v28  ;;  %v266_v44 = vpack.c.bf16 %v260_v39, %v256_v37 }
 0x134   :  { %v281_v47 = vand.u32 %v279_v41, %v263_v40  ;;  %v287_v48 = vand.u32 %v279_v41, %v265_v42 }
 0x135   :  { %v284_v45 = vand.u32 %v279_v41, %v264_v43  ;;  %v290_v46 = vand.u32 %v279_v41, %v266_v44 }
 0x137   :  { %292 = vmatprep.subr.bf16.mxu0 %v284_v45  ;;  %335 = vmatprep.subr.bf16.mxu1 %v290_v46 }
 0x138   :  { %293 = vmatpush1.bf16.msra.mxu0 %v281_v47  ;;  %336 = vmatpush1.bf16.msra.mxu1 %v287_v48 }
 0x13b   :  { %493 = vmatmul.mubr.msk.bf16.vlgmr.msra.gmra.mrb[4].mxu0 %vm272_vm5, %v526_v49  ;;  %494 = vmatmul.mubr.msk.bf16.vlgmr.msra.gmra.mrb[4].mxu1 %vm272_vm5, %v526_v49 }
 0x20e   :  { %v326_v50 = vpop.f32.mrb[4].mxu0  ;;  %v369_v51 = vpop.f32.mrb[4].mxu1 }
 0x20f   :  { %378 = vst [vmem:[#allocation11] sm:$0xff] %v326_v50  ;;  %v382_v52 = vmax.f32 %v326_v50, 0.0  ;;  %409 = vst [vmem:[#allocation11 + $0x20] sm:$0xff] %v369_v51  ;;  %v413_v53 = vmax.f32 %v369_v51, 0.0  ;;  %v328_v54 = vpop.f32.mrb[5].mxu0  ;;  %v371_v55 = vpop.f32.mrb[5].mxu1 }
 0x210   :  { %379 = vst [vmem:[#allocation11 + $0x8] sm:$0xff] %v328_v54  ;;  %v383_v56 = vmax.f32 %v328_v54, 0.0  ;;  %410 = vst [vmem:[#allocation11 + $0x28] sm:$0xff] %v371_v55  ;;  %v414_v57 = vmax.f32 %v371_v55, 0.0  ;;  %v330_v58 = vpop.f32.mrb[6].mxu0  ;;  %v373_v59 = vpop.f32.mrb[6].mxu1 }
 0x211   :  { %380 = vst [vmem:[#allocation11 + $0x10] sm:$0xff] %v330_v58  ;;  %v384_v60 = vmax.f32 %v330_v58, 0.0  ;;  %411 = vst [vmem:[#allocation11 + $0x30] sm:$0xff] %v373_v59  ;;  %v415_v61 = vmax.f32 %v373_v59, 0.0  ;;  %v332_v62 = vpop.f32.mrb[7].mxu0  ;;  %v375_v63 = vpop.f32.mrb[7].mxu1 }
 0x212   :  { %381 = vst [vmem:[#allocation11 + $0x18] sm:$0xff] %v332_v62  ;;  %v385_v0 = vmax.f32 %v332_v62, 0.0  ;;  %412 = vst [vmem:[#allocation11 + $0x38] sm:$0xff] %v375_v63  ;;  %v416_v1 = vmax.f32 %v375_v63, 0.0  ;;  %v417_v2 = vadd.f32 %v414_v57, %v413_v53  ;;  %v386_v3 = vadd.f32 %v383_v56, %v382_v52 }
 0x214   :  { %418 = vadd.xlane.f32.xlu0 %v417_v2  ;;  %387 = vadd.xlane.f32.xlu1 %v386_v3  ;;  %v420_v4 = vadd.f32 %v416_v1, %v415_v61  ;;  %v389_v5 = vadd.f32 %v385_v0, %v384_v60 }
 0x218   :  { %421 = vadd.xlane.f32.xlu0 %v420_v4  ;;  %390 = vadd.xlane.f32.xlu1 %v389_v5 }
 0x219   :  { %626 = shalt.err (!%p623_p8)
}
 0x21a   :  { %s627_s29 = scalar_lea.hbm %s821_s6, 1024 }
 0x21b   :  { %p628_p9 = scmp.ne.s32.totalorder %s821_s6, %s627_s29  ;;  %p631_p10 = scmp.lt.u32.totalorder %s627_s29, %s821_s6 }
 0x21d   :  { %p633_p11 = pnand %p631_p10, %p628_p9 }
 0x21f   :  { %636 = shalt.err (!%p633_p11)
}
 0x220   :  { %465 = dma.vmem_to_hbm [thread:$0]  %s460_s25, 1024, %s821_s6, [#allocation12], %s673_s1, %s673_s1, %s674_s21   ;;  %v425_v10 = vld [vmem:[#allocation8] sm:$0xff]  ;;  %v426_v11 = vld [vmem:[#allocation8 + $0x8] sm:$0xff]  ;;  %vm441_vm6 = vcmask 1040384  }
 0x221   :  { %v436_v32 = vld [vmem:[%s819_s4] sm:$0x1]  ;;  %s682_s14 = smov [#allocation10]  }
 0x222   :  { %v406_v35 = vld [vmem:[%s819_s4] sm:$0x1]  ;;  %s450_s15 = sshll.u32 %s682_s14, 4  ;;  %s451_s15 = int_to_ptr.vmem [resolvable:$true] %s450_s15 }
 0x223   :  { %s637_s16 = scalar_lea.vmem %s451_s15, 32  ;;  %p642_p13 = scmp.lt.s32.totalorder %s451_s15, %s451_s15 }
 0x224   :  { %p638_p12 = scmp.ne.s32.totalorder %s451_s15, %s637_s16  ;;  %p643_p0 = scmp.lt.s32.totalorder %s637_s16, %s637_s16 }
 0x226   :  { %p644_p1 = por %p643_p0, %p642_p13 }
 0x228   :  { %p645_p2 = pnand %p644_p1, %p638_p12 }
 0x2a1   :  { %v419_v6 = vpop.xlane.xlu0 %418  ;;  %v388_v7 = vpop.xlane.xlu1 %387 }
 0x2a2   :  { %v423_v8 = vmul.f32 0.00390625, %v419_v6  ;;  %v393_v9 = vmul.f32 0.00390625, %v388_v7 }
 0x2a4   :  { %v427_v16 = vmul.f32 %v425_v10, %v423_v8  ;;  %v397_v17 = vmul.f32 %v425_v10, %v393_v9 }
 0x2a5   :  { %v422_v12 = vpop.xlane.xlu0 %421  ;;  %v391_v13 = vpop.xlane.xlu1 %390 }
 0x2a6   :  { %v424_v14 = vmul.f32 0.00390625, %v422_v12  ;;  %v394_v15 = vmul.f32 0.00390625, %v391_v13 }
 0x2a8   :  { %v428_v18 = vmul.f32 %v426_v11, %v424_v14  ;;  %v398_v19 = vmul.f32 %v426_v11, %v394_v15 }
 0x2aa   :  { %v429_v20 = vadd.f32 %v428_v18, %v427_v16  ;;  %v399_v21 = vadd.f32 %v398_v19, %v397_v17 }
 0x2ac   :  { %v430_v22 = vrot.slane %v429_v20, 4  ;;  %v400_v23 = vrot.slane %v399_v21, 4 }
 0x2ae   :  { %v431_v24 = vadd.f32 %v430_v22, %v429_v20  ;;  %v401_v25 = vadd.f32 %v400_v23, %v399_v21 }
 0x2b0   :  { %v432_v26 = vrot.slane %v431_v24, 2  ;;  %v402_v27 = vrot.slane %v401_v25, 2 }
 0x2b2   :  { %v433_v28 = vadd.f32 %v432_v26, %v431_v24  ;;  %v403_v29 = vadd.f32 %v402_v27, %v401_v25 }
 0x2b4   :  { %v434_v30 = vrot.slane %v433_v28, 1  ;;  %v404_v31 = vrot.slane %v403_v29, 1 }
 0x2b6   :  { %v405_v33 = vadd.f32 %v404_v31, %v403_v29  ;;  %v435_v34 = vadd.f32 %v434_v30, %v433_v28 }
 0x2b8   :  { %v437_v36 = vadd.f32 %v436_v32, %v435_v34  ;;  %v407_v37 = vadd.f32 %v406_v35, %v405_v33 }
 0x2ba   :  { %v439_v38 = vrot.slane %v437_v36, 7 }
 0x2bc   :  { %v442_v39 = vsel %vm441_vm6, %v407_v37, %v439_v38 }
 0x2bd   :  { %443 = vst [vmem:[#allocation10] sm:$0x3] %v442_v39 }
 0x2be   :  { %648 = shalt.err (!%p645_p2)
}
 0x2bf   :  { %s649_s4 = scalar_lea.hbm %s820_s5, 32 }
 0x2c0   :  { %p650_p3 = scmp.ne.s32.totalorder %s820_s5, %s649_s4  ;;  %p653_p4 = scmp.lt.u32.totalorder %s649_s4, %s820_s5 }
 0x2c2   :  { %p655_p5 = pnand %p653_p4, %p650_p3 }
 0x2c4   :  { %658 = shalt.err (!%p655_p5)
}
 0x2c5   :  { %453 = dma.vmem_to_hbm [thread:$0]  %s451_s15, 32, %s820_s5, [#allocation4]  }
 0x2c6   :  { %665 = dma.done.wait [#allocation4], 32  }
 0x2c7   :  { %666 = vsyncadd [#allocation4], 4294967264 }
 0x2c8   :  { %667 = dma.done.wait [#allocation12], 1024  }
 0x2c9   :  { %668 = vsyncadd [#allocation12], 4294966272 }
 0x2ca   :  { %472 = vsyncpa [#allocation3], 1 }
 0x2cb   :  { %473 = vsyncpa [#allocation6], 1 }
 0x2cc   :  { %474 = vsyncpa [#allocation9], 1 }
 0x2cd   :  { %475 = vsyncpa [#allocation4], 1 }
 0x2ce   :  { %476 = vsyncpa [#allocation12], 1 }

</bundles_post_ra>
